<compile_context>
chip_gen: v6e
topology: v6e:2x2x1
jax: 0.10.0
libtpu: 0.0.40
codegen_flags: <defaults>
</compile_context>

<pallas_src>
import jax
import jax.numpy as jnp
from jax import lax
from jax.experimental import pallas as pl
from jax.experimental.pallas import tpu as pltpu

# ---------------- config (small synthetic shapes) ----------------
B, K = 2, 8                     # batch, set size ("..., K, 2" input)
NUM_TASKS, NUM_PLAYERS = 15, 7  # num_embeddings for the two PaddedEmbeds
TASK_DIM, PLAYER_DIM = 16, 16   # embedding output dims
INPUT_DIM = TASK_DIM + PLAYER_DIM
HIDDEN_DIM = 32
OUTPUT_DIM = 32
NUM_HIDDEN_LAYERS = 2
LN_EPS = 1e-5                   # PyTorch nn.LayerNorm default
AGG_METHOD = "maxpool"

# padded (lane-dense) widths used inside the kernel
N_EMB = (NUM_TASKS + 1) + (NUM_PLAYERS + 1)   # 24 rows of block-diag table
N_EMB_PAD = 32                                # padded to sublane multiple
FEAT_PAD = 128                                # lane-dense feature width
N_LAYERS = NUM_HIDDEN_LAYERS + 1              # linears in the MLP
BIAS_ROWS = 16                                # bias block padded to bf16 tile
W_STRIDE = FEAT_PAD + BIAS_ROWS               # rows per (W, b) block in wbuf

# matmul operand dtype: bf16 (MXU-native on v5e/v6e/v7x; f32 dots are emulated
# as multiple bf16 passes).  Set to jnp.float32 for bit-accuracy checks.
MATMUL_DTYPE = jnp.bfloat16

DESIRED_B_BLK = 512             # -> m_blk = 4096 rows; a few MiB live VMEM


# ---------------- Pallas kernel ----------------
def tasks_kernel(idx_ref, wbuf_ref, out_ref):
    # idx_ref:  (Mb, 2) int32.  col 0 = task_idx + 1, col 1 = player_idx + 1 + 16
    # wbuf_ref: (N_EMB_PAD + N_LAYERS*W_STRIDE, FEAT_PAD) MATMUL_DTYPE, packed
    #           [block-diag emb table (32 rows);
    #            per layer: W_i (128 rows), b_i (16 rows, row 0 used)]
    # out_ref:  (Bb, FEAT_PAD) f32
    idx = idx_ref[...]
    mb = idx.shape[0]
    b_blk = out_ref.shape[0]
    kk = mb // b_blk

    # fused one-hot gather for BOTH tables in one MXU matmul (task ids land in
    # cols 0..15, player ids in cols 16..23 of the block-diag table).
    col = lax.broadcasted_iota(jnp.int32, (mb, N_EMB_PAD), 1)
    oh = jnp.logical_or(col == idx[:, 0:1],
                        col == idx[:, 1:2]).astype(MATMUL_DTYPE)
    emb = wbuf_ref[0:N_EMB_PAD, :]
    h = jnp.dot(oh, emb, preferred_element_type=jnp.float32)   # (Mb, 128) f32

    # LayerNorm over the real INPUT_DIM features (padded lanes are zero, so the
    # full-lane sums are exact; biased variance like torch).  gamma/beta are
    # folded into layer-0 weights; junk in padded lanes after normalization is
    # annihilated by the zero-padded rows of W0.
    inv_d = 1.0 / INPUT_DIM
    mean = jnp.sum(h, axis=-1, keepdims=True) * inv_d
    var = jnp.sum(h * h, axis=-1, keepdims=True) * inv_d - mean * mean
    var = jnp.maximum(var, 0.0)          # guard one-pass cancellation
    h = (h - mean) * lax.rsqrt(var + LN_EPS)

    # MLP: [Linear + ReLU] * num_hidden_layers, then final Linear.
    # bf16 operands, f32 accumulation; bias add / ReLU in f32 on the VPU.
    for i in range(N_LAYERS):
        r0 = N_EMB_PAD + i * W_STRIDE
        w = wbuf_ref[r0:r0 + FEAT_PAD, :]                            # (128,128)
        bias = wbuf_ref[r0 + FEAT_PAD:r0 + FEAT_PAD + 1, :].astype(jnp.float32)
        h = jnp.dot(h.astype(MATMUL_DTYPE), w,
                    preferred_element_type=jnp.float32) + bias
        if i < N_LAYERS - 1:
            h = jnp.maximum(h, 0.0)

    # aggregate(method='maxpool', dim=-2): masked_fill(-inf) then max over K.
    pad_row = idx[:, 0:1] == 0           # task_idx == -1  <=>  idx col0 == 0
    h = jnp.where(pad_row, -jnp.inf, h)
    out_ref[...] = jnp.max(h.reshape(b_blk, kk, FEAT_PAD), axis=1)


# ---------------- param packing (wrapper-side, pure JAX) ----------------
def pack_params(params, dtype):
    """Single packed constant buffer: block-diag embed table + folded MLP."""
    tt = params["task_tab"]       # (NUM_TASKS+1, TASK_DIM), row 0 == 0
    pt = params["player_tab"]     # (NUM_PLAYERS+1, PLAYER_DIM), row 0 == 0
    n_t, d_t = tt.shape
    n_p, d_p = pt.shape
    emb = jnp.zeros((N_EMB_PAD, FEAT_PAD), jnp.float32)
    emb = emb.at[:n_t, :d_t].set(tt)
    emb = emb.at[n_t:n_t + n_p, d_t:d_t + d_p].set(pt)

    # fold LayerNorm affine into the first Linear (done in f32, then cast)
    gamma = params["gamma"][0]    # (INPUT_DIM,)
    beta = params["beta"][0]
    (w0, b0), *rest = params["mlp"]
    layers = [(gamma[:, None] * w0, beta @ w0 + b0[0])]
    layers += [(w, b[0]) for (w, b) in rest]

    blocks = [emb]
    for w, b in layers:
        wpad = jnp.zeros((FEAT_PAD, FEAT_PAD), jnp.float32)
        wpad = wpad.at[:w.shape[0], :w.shape[1]].set(w)
        bpad = jnp.zeros((BIAS_ROWS, FEAT_PAD), jnp.float32)
        bpad = bpad.at[0, :b.shape[0]].set(b)
        blocks.append(wpad)
        blocks.append(bpad)
    return jnp.concatenate(blocks, axis=0).astype(dtype)   # (464, 128)


# ---------------- block-size selection ----------------
def _choose_b_blk(b):
    # Biggest block that comfortably fits VMEM, but capped so the grid keeps
    # >= 2 steps whenever the batch allows it (v7x has 2 TensorCores and
    # "parallel" only shards across multiple grid steps).  Always 8-aligned.
    half = ((b // 2) // 8) * 8
    if half >= 8:
        return min(DESIRED_B_BLK, half)
    return 8


# ---------------- wrapper ----------------
def tasks_model_forward(x, params):
    """x: (B, K, 2) int32; returns (B, OUTPUT_DIM) float32."""
    b, k, _ = x.shape
    b_blk = _choose_b_blk(b)
    b_pad = ((b + b_blk - 1) // b_blk) * b_blk
    m_blk = b_blk * k
    grid = (b_pad // b_blk,)

    t = x[..., 0].astype(jnp.int32)
    p = x[..., 1].astype(jnp.int32)
    # +1 (PaddedEmbed) and offset the player indices into the block-diag table
    idx0 = t + 1
    idx1 = p + 1 + (NUM_TASKS + 1)
    if b_pad > b:
        pad_n = b_pad - b
        # padded batches are all pad rows (task idx 0 -> masked, -inf, sliced off)
        idx0 = jnp.concatenate([idx0, jnp.zeros((pad_n, k), jnp.int32)], axis=0)
        idx1 = jnp.concatenate(
            [idx1, jnp.full((pad_n, k), NUM_TASKS + 1, jnp.int32)], axis=0)
    # TODO(synk): idx is lane-sparse (2/128 lanes); widen its minor dim if a
    # bundle dump at very large M shows relayouts around the one-hot build.
    idx = jnp.stack([idx0.reshape(-1), idx1.reshape(-1)], axis=1)  # (M_pad, 2)

    wbuf = pack_params(params, MATMUL_DTYPE)

    m_pad = b_pad * k
    flops = 2 * m_pad * (N_EMB_PAD * FEAT_PAD + N_LAYERS * FEAT_PAD * FEAT_PAD)
    bytes_accessed = (idx.size * 4
                      + wbuf.size * jnp.dtype(MATMUL_DTYPE).itemsize
                      + b_pad * FEAT_PAD * 4)

    out = pl.pallas_call(
        tasks_kernel,
        out_shape=jax.ShapeDtypeStruct((b_pad, FEAT_PAD), jnp.float32),
        grid_spec=pltpu.PrefetchScalarGridSpec(
            num_scalar_prefetch=0,
            grid=grid,
            in_specs=[
                pl.BlockSpec((m_blk, 2), lambda i: (i, 0)),
                # constant block (same index every step -> fetched once).
                # TODO(synk): pipeline_mode=pl.Buffered(1) would halve this
                # constant's VMEM footprint; kept default for compile safety.
                pl.BlockSpec(wbuf.shape, lambda i: (0, 0)),
            ],
            out_specs=pl.BlockSpec((b_blk, FEAT_PAD), lambda i: (i, 0)),
        ),
        compiler_params=pltpu.CompilerParams(
            dimension_semantics=("parallel",)),
        cost_estimate=pl.CostEstimate(
            flops=flops, transcendentals=m_pad, bytes_accessed=bytes_accessed),
    )(idx, wbuf)
    return out[:b, :OUTPUT_DIM]


# ---------------- deterministic param init ----------------
def init_params(key):
    ks = jax.random.split(key, 4 + 2 * (NUM_HIDDEN_LAYERS + 1))
    task_tab = 0.1 * jax.random.normal(ks[0], (NUM_TASKS + 1, TASK_DIM),
                                       jnp.float32)
    task_tab = task_tab.at[0].set(0.0)        # padding_idx=0
    player_tab = 0.1 * jax.random.normal(ks[1], (NUM_PLAYERS + 1, PLAYER_DIM),
                                         jnp.float32)
    player_tab = player_tab.at[0].set(0.0)    # padding_idx=0
    gamma = 1.0 + 0.05 * jax.random.normal(ks[2], (1, INPUT_DIM), jnp.float32)
    beta = 0.05 * jax.random.normal(ks[3], (1, INPUT_DIM), jnp.float32)

    dims = [INPUT_DIM] + [HIDDEN_DIM] * NUM_HIDDEN_LAYERS + [OUTPUT_DIM]
    mlp = []
    for i in range(len(dims) - 1):
        fan_in = dims[i]
        w = jax.random.normal(ks[4 + 2 * i], (dims[i], dims[i + 1]),
                              jnp.float32) / jnp.sqrt(float(fan_in))
        bias = 0.01 * jax.random.normal(ks[5 + 2 * i], (1, dims[i + 1]),
                                        jnp.float32)
        mlp.append((w, bias))
    return {"task_tab": task_tab, "player_tab": player_tab,
            "gamma": gamma, "beta": beta, "mlp": mlp}


# ---------------- pure-JAX f32 reference (unfused, for correctness) ----------------
def reference(x, params):
    t = x[..., 0].astype(jnp.int32)
    p = x[..., 1].astype(jnp.int32)
    mask = (t == -1)[..., None]
    e_t = params["task_tab"][t + 1]
    e_p = params["player_tab"][p + 1]
    h = jnp.concatenate([e_t, e_p], axis=-1)
    mean = jnp.mean(h, axis=-1, keepdims=True)
    var = jnp.mean(jnp.square(h - mean), axis=-1, keepdims=True)
    h = (h - mean) / jnp.sqrt(var + LN_EPS) * params["gamma"][0] + params["beta"][0]
    layers = params["mlp"]
    for i, (w, b) in enumerate(layers):
        h = h @ w + b[0]
        if i < len(layers) - 1:
            h = jnp.maximum(h, 0.0)
    h = jnp.where(mask, -jnp.inf, h)
    return jnp.max(h, axis=-2)


def _make_inputs(key, b):
    kt, kp = jax.random.split(key)
    t = jax.random.randint(kt, (b, K), -1, NUM_TASKS)
    p = jax.random.randint(kp, (b, K), -1, NUM_PLAYERS)
    p = jnp.where(t == -1, -1, p)                # pad rows are fully padded
    t = t.at[:, 0].set(jnp.maximum(t[:, 0], 0))  # >=1 valid entry per batch
    p = p.at[:, 0].set(jnp.maximum(p[:, 0], 0))
    return jnp.stack([t, p], axis=-1).astype(jnp.int32)   # (b, K, 2)


if __name__ == "__main__":
    key = jax.random.PRNGKey(0)
    kpar, kdata = jax.random.split(key)
    params = init_params(kpar)

    # bf16 matmul operands vs. the f32 reference -> relaxed tolerance.
    if MATMUL_DTYPE is jnp.float32:
        tol = dict(atol=1e-4, rtol=1e-4)
    else:
        tol = dict(atol=5e-2, rtol=5e-2)

    # case 0: tiny spec size (B=2); case 1: multi-block + batch-padding path.
    for case_i, b_test in enumerate((B, 40)):
        kdata, kin = jax.random.split(kdata)
        x = _make_inputs(kin, b_test)

        out = tasks_model_forward(x, params)
        jax.block_until_ready(out)

        ref = reference(x, params)
        assert out.shape == (b_test, OUTPUT_DIM)
        assert bool(jnp.all(jnp.isfinite(out)))
        assert jnp.allclose(out, ref, **tol), (
            f"case {case_i}: max abs err {jnp.max(jnp.abs(out - ref))}")
    print("KERNEL_OK")
</pallas_src>

<mosaic_0001>
module attributes {stable_mosaic.version = 11 : i64} {
  func.func @tasks_kernel(%arg0: i32, %arg1: memref<64x2xi32, #tpu.memory_space<vmem>>, %arg2: memref<464x128xbf16, #tpu.memory_space<vmem>>, %arg3: memref<8x128xf32, #tpu.memory_space<vmem>>) attributes {dimension_semantics = [#tpu.dimension_semantics<parallel>], iteration_bounds = array<i64: 1>, scalar_prefetch = 0 : i64, scratch_operands = 0 : i64, tpu.core_type = #tpu.core_type<tc>, window_params = [{transform_indices = @transform_0, window_bounds = array<i64: 64, 2>}, {pipeline_mode = #tpu.pipeline_mode<synchronous>, transform_indices = @transform_1, window_bounds = array<i64: 464, 128>}, {transform_indices = @transform_2, window_bounds = array<i64: 8, 128>}]} {
    %c0 = arith.constant 0 : index
    %c0_0 = arith.constant 0 : index
    %0 = vector.load %arg1[%c0, %c0_0] : memref<64x2xi32, #tpu.memory_space<vmem>>, vector<64x2xi32>
    %1 = tpu.iota {dimensions = array<i32: 1>} : vector<64x32xi32>
    %2 = vector.extract_strided_slice %0 {offsets = [0, 0], sizes = [64, 1], strides = [1, 1]} : vector<64x2xi32> to vector<64x1xi32>
    %3 = vector.broadcast %2 : vector<64x1xi32> to vector<64x32xi32>
    %4 = arith.cmpi eq, %1, %3 : vector<64x32xi32>
    %5 = vector.extract_strided_slice %0 {offsets = [0, 1], sizes = [64, 1], strides = [1, 1]} : vector<64x2xi32> to vector<64x1xi32>
    %6 = vector.broadcast %5 : vector<64x1xi32> to vector<64x32xi32>
    %7 = arith.cmpi eq, %1, %6 : vector<64x32xi32>
    %8 = arith.ori %4, %7 : vector<64x32xi1>
    %9 = arith.extui %8 : vector<64x32xi1> to vector<64x32xi32>
    %10 = arith.sitofp %9 : vector<64x32xi32> to vector<64x32xf32>
    %11 = arith.truncf %10 : vector<64x32xf32> to vector<64x32xbf16>
    %c0_1 = arith.constant 0 : index
    %c0_2 = arith.constant 0 : index
    %12 = vector.load %arg2[%c0_1, %c0_2] : memref<464x128xbf16, #tpu.memory_space<vmem>>, vector<32x128xbf16>
    %cst = arith.constant dense<0.000000e+00> : vector<64x128xf32>
    %13 = tpu.matmul %11, %12, %cst {dimension_numbers = #tpu.dot_dimension_numbers<[1], [0], [0], [1], [0, 0, 1, 1], [], []>} : vector<64x32xbf16>, vector<32x128xbf16>, vector<64x128xf32> -> vector<64x128xf32>
    %cst_3 = arith.constant dense<0.000000e+00> : vector<64xf32>
    %14 = vector.multi_reduction <add>, %13, %cst_3 [1] : vector<64x128xf32> to vector<64xf32>
    %15 = vector.shape_cast %14 : vector<64xf32> to vector<64x1xf32>
    %cst_4 = arith.constant 3.125000e-02 : f32
    %16 = vector.broadcast %cst_4 : f32 to vector<64x1xf32>
    %17 = arith.mulf %15, %16 : vector<64x1xf32>
    %18 = arith.mulf %13, %13 : vector<64x128xf32>
    %cst_5 = arith.constant dense<0.000000e+00> : vector<64xf32>
    %19 = vector.multi_reduction <add>, %18, %cst_5 [1] : vector<64x128xf32> to vector<64xf32>
    %20 = vector.shape_cast %19 : vector<64xf32> to vector<64x1xf32>
    %cst_6 = arith.constant 3.125000e-02 : f32
    %21 = vector.broadcast %cst_6 : f32 to vector<64x1xf32>
    %22 = arith.mulf %20, %21 : vector<64x1xf32>
    %23 = arith.mulf %17, %17 : vector<64x1xf32>
    %24 = arith.subf %22, %23 : vector<64x1xf32>
    %cst_7 = arith.constant 0.000000e+00 : f32
    %25 = vector.broadcast %cst_7 : f32 to vector<64x1xf32>
    %26 = arith.maximumf %24, %25 : vector<64x1xf32>
    %27 = vector.broadcast %17 : vector<64x1xf32> to vector<64x128xf32>
    %28 = arith.subf %13, %27 : vector<64x128xf32>
    %cst_8 = arith.constant 9.99999974E-6 : f32
    %29 = vector.broadcast %cst_8 : f32 to vector<64x1xf32>
    %30 = arith.addf %26, %29 : vector<64x1xf32>
    %31 = math.rsqrt %30 : vector<64x1xf32>
    %32 = vector.broadcast %31 : vector<64x1xf32> to vector<64x128xf32>
    %33 = arith.mulf %28, %32 : vector<64x128xf32>
    %c32 = arith.constant 32 : index
    %c0_9 = arith.constant 0 : index
    %34 = vector.load %arg2[%c32, %c0_9] : memref<464x128xbf16, #tpu.memory_space<vmem>>, vector<128x128xbf16>
    %c160 = arith.constant 160 : index
    %c0_10 = arith.constant 0 : index
    %35 = vector.load %arg2[%c160, %c0_10] : memref<464x128xbf16, #tpu.memory_space<vmem>>, vector<1x128xbf16>
    %36 = arith.extf %35 : vector<1x128xbf16> to vector<1x128xf32>
    %37 = arith.truncf %33 : vector<64x128xf32> to vector<64x128xbf16>
    %cst_11 = arith.constant dense<0.000000e+00> : vector<64x128xf32>
    %38 = tpu.matmul %37, %34, %cst_11 {dimension_numbers = #tpu.dot_dimension_numbers<[1], [0], [0], [1], [0, 0, 1, 1], [], []>} : vector<64x128xbf16>, vector<128x128xbf16>, vector<64x128xf32> -> vector<64x128xf32>
    %39 = vector.broadcast %36 : vector<1x128xf32> to vector<64x128xf32>
    %40 = arith.addf %38, %39 : vector<64x128xf32>
    %cst_12 = arith.constant 0.000000e+00 : f32
    %41 = vector.broadcast %cst_12 : f32 to vector<64x128xf32>
    %42 = arith.maximumf %40, %41 : vector<64x128xf32>
    %c176 = arith.constant 176 : index
    %c0_13 = arith.constant 0 : index
    %43 = vector.load %arg2[%c176, %c0_13] : memref<464x128xbf16, #tpu.memory_space<vmem>>, vector<128x128xbf16>
    %c304 = arith.constant 304 : index
    %c0_14 = arith.constant 0 : index
    %44 = vector.load %arg2[%c304, %c0_14] : memref<464x128xbf16, #tpu.memory_space<vmem>>, vector<1x128xbf16>
    %45 = arith.extf %44 : vector<1x128xbf16> to vector<1x128xf32>
    %46 = arith.truncf %42 : vector<64x128xf32> to vector<64x128xbf16>
    %cst_15 = arith.constant dense<0.000000e+00> : vector<64x128xf32>
    %47 = tpu.matmul %46, %43, %cst_15 {dimension_numbers = #tpu.dot_dimension_numbers<[1], [0], [0], [1], [0, 0, 1, 1], [], []>} : vector<64x128xbf16>, vector<128x128xbf16>, vector<64x128xf32> -> vector<64x128xf32>
    %48 = vector.broadcast %45 : vector<1x128xf32> to vector<64x128xf32>
    %49 = arith.addf %47, %48 : vector<64x128xf32>
    %cst_16 = arith.constant 0.000000e+00 : f32
    %50 = vector.broadcast %cst_16 : f32 to vector<64x128xf32>
    %51 = arith.maximumf %49, %50 : vector<64x128xf32>
    %c320 = arith.constant 320 : index
    %c0_17 = arith.constant 0 : index
    %52 = vector.load %arg2[%c320, %c0_17] : memref<464x128xbf16, #tpu.memory_space<vmem>>, vector<128x128xbf16>
    %c448 = arith.constant 448 : index
    %c0_18 = arith.constant 0 : index
    %53 = vector.load %arg2[%c448, %c0_18] : memref<464x128xbf16, #tpu.memory_space<vmem>>, vector<1x128xbf16>
    %54 = arith.extf %53 : vector<1x128xbf16> to vector<1x128xf32>
    %55 = arith.truncf %51 : vector<64x128xf32> to vector<64x128xbf16>
    %cst_19 = arith.constant dense<0.000000e+00> : vector<64x128xf32>
    %56 = tpu.matmul %55, %52, %cst_19 {dimension_numbers = #tpu.dot_dimension_numbers<[1], [0], [0], [1], [0, 0, 1, 1], [], []>} : vector<64x128xbf16>, vector<128x128xbf16>, vector<64x128xf32> -> vector<64x128xf32>
    %57 = vector.broadcast %54 : vector<1x128xf32> to vector<64x128xf32>
    %58 = arith.addf %56, %57 : vector<64x128xf32>
    %59 = vector.extract_strided_slice %0 {offsets = [0, 0], sizes = [64, 1], strides = [1, 1]} : vector<64x2xi32> to vector<64x1xi32>
    %c0_i32 = arith.constant 0 : i32
    %60 = vector.broadcast %c0_i32 : i32 to vector<64x1xi32>
    %61 = arith.cmpi eq, %59, %60 : vector<64x1xi32>
    %cst_20 = arith.constant 0xFF800000 : f32
    %62 = vector.shape_cast %61 : vector<64x1xi1> to vector<64x1xi1>
    %63 = vector.broadcast %62 : vector<64x1xi1> to vector<64x128xi1>
    %64 = vector.broadcast %cst_20 : f32 to vector<64x128xf32>
    %65 = arith.select %63, %64, %58 : vector<64x128xi1>, vector<64x128xf32>
    %66 = vector.shape_cast %65 : vector<64x128xf32> to vector<8x8x128xf32>
    %cst_21 = arith.constant dense<0xFF800000> : vector<8x128xf32>
    %67 = vector.multi_reduction <maximumf>, %66, %cst_21 [1] : vector<8x8x128xf32> to vector<8x128xf32>
    %c0_22 = arith.constant 0 : index
    %c0_23 = arith.constant 0 : index
    %68 = vector.load %arg3[%c0_22, %c0_23] : memref<8x128xf32, #tpu.memory_space<vmem>>, vector<8x128xf32>
    tpu.vector_store %arg3[%c0_22, %c0_23], %67 {strides = array<i32>} : memref<8x128xf32, #tpu.memory_space<vmem>>, vector<8x128xf32>,
    return
  }
  func.func @transform_0(%arg0: i32) -> (i32, i32) {
    %c0_i32 = arith.constant 0 : i32
    %c0_i32_0 = arith.constant 0 : i32
    return %arg0, %c0_i32 : i32, i32
  }
  func.func @transform_1(%arg0: i32) -> (i32, i32) {
    %c0_i32 = arith.constant 0 : i32
    %c0_i32_0 = arith.constant 0 : i32
    %c0_i32_1 = arith.constant 0 : i32
    return %c0_i32, %c0_i32_0 : i32, i32
  }
  func.func @transform_2(%arg0: i32) -> (i32, i32) {
    %c0_i32 = arith.constant 0 : i32
    %c0_i32_0 = arith.constant 0 : i32
    return %arg0, %c0_i32 : i32, i32
  }
}

</mosaic_0001>

<bundles_post_ra>
// kernel: tpu_custom_call.1
= control target key start
LH: loop header
LB: loop body
LE: loop exit
PB: predicated region body
PF: predicated region fallthrough
CT: control target
= control target key end

     0   :  { %7 = vsyncpa [#allocation3], 0  ;;  %s1357_s0 = inlined_call_operand.vmem [shape: s32[64,2], index: 0, kind: input, shape index: {}]   ;;  %s1358_s1 = inlined_call_operand.hbm [shape: bf16[464,128], index: 1, kind: input, shape index: {}]   ;;  %s1359_s2 = inlined_call_operand.hbm [shape: f32[8,128], index: 2, kind: output, shape index: {}]  }
   0x1   :  { %8 = vsyncpa [#allocation4], 0  ;;  %s1181_s9 = smov [#allocation2]  }
   0x2   :  { %s16_s10 = sshll.u32 %s1181_s9, 4  ;;  %s17_s10 = int_to_ptr.vmem [resolvable:$true] %s16_s10 }
   0x3   :  { %s1145_s11 = scalar_lea.vmem %s17_s10, 3712  ;;  %p1150_p1 = scmp.lt.s32.totalorder %s17_s10, %s17_s10 }
   0x4   :  { %p1146_p0 = scmp.ne.s32.totalorder %s17_s10, %s1145_s11  ;;  %p1151_p2 = scmp.lt.s32.totalorder %s1145_s11, %s1145_s11 }
   0x6   :  { %p1152_p3 = por %p1151_p2, %p1150_p1 }
   0x8   :  { %p1153_p4 = pnand %p1152_p3, %p1146_p0 }
   0xa   :  { %1156 = shalt.err (!%p1153_p4)
}
   0xb   :  { %s1182_s12 = smov 64   ;;  %s1183_s13 = smov 4  }
   0xc   :  { %22 = dma.hbm_to_vmem [thread:$0]  %s1358_s1, 3712, %s17_s10, [#allocation3], %s1182_s12, %s1182_s12, %s1183_s13  }
   0xd   :  { %1177 = dma.done.wait [#allocation3], 3712  }
   0xe   :  { %1178 = vsyncadd [#allocation3], 4294963584  ;;  %v1184_v0 = vmov 1   ;;  %v1185_v1 = vmov 0   ;;  %v1210_v2 = vld [vmem:[%s1357_s0] sm:$0xff]  ;;  %v1217_v3 = vld [vmem:[%s1357_s0 + $0x8] sm:$0xff]  ;;  %v35_v12 = vlaneseq }
   0xf   :  { %1083 = vset.pattern.permute.xlu1 %v1184_v0  ;;  %1082 = vset.pattern.permute.xlu0 %v1185_v1  ;;  %v1222_v4 = vld [vmem:[%s1357_s0 + $0x10] sm:$0xff]  ;;  %v1228_v5 = vld [vmem:[%s1357_s0 + $0x18] sm:$0xff]  ;;  %v1095_v6 = vld [vmem:[#allocation2 + $0x8] sm:$0xff]   ;;  %v1186_v20 = vmov 0.0   ;;  %vm145_vm6 = vcmask 261120  }
  0x10   :  { %70 = vperm.xlu1 %1083, %v1210_v2   ;;  %38 = vperm.xlu0 %1082, %v1210_v2   ;;  %v1096_v7 = vld [vmem:[#allocation2] sm:$0xff]   ;;  %v1238_v8 = vld [vmem:[%s1357_s0 + $0x28] sm:$0xff]  ;;  %v1250_v10 = vld [vmem:[%s1357_s0 + $0x30] sm:$0xff]  ;;  %v36_v15 = vand.u32 127, %v35_v12 }
  0x11   :  { %991 = vmatprep.subr.bf16.mxu0 %v1095_v6  ;;  %v1245_v9 = vld [vmem:[%s1357_s0 + $0x20] sm:$0xff]  ;;  %v1262_v11 = vld [vmem:[%s1357_s0 + $0x38] sm:$0xff]  ;;  %v1097_v51 = vld [vmem:[#allocation2 + $0x48] sm:$0xff]   ;;  %s1187_s0 = smov [#allocation5]  }
  0x12   :  { %992 = vmatpush3.bf16.msra.mxu0 %v1095_v6  ;;  %1003 = vmatprep.subr.bf16.mxu1 %v1097_v51  ;;  %v1098_v52 = vld [vmem:[#allocation2 + $0x40] sm:$0xff]   ;;  %v1099_v56 = vld [vmem:[#allocation2 + $0x38] sm:$0xff]   ;;  %v1100_v59 = vld [vmem:[#allocation2 + $0x30] sm:$0xff]   ;;  %s902_s3 = sshll.u32 %s1187_s0, 4  ;;  %s903_s3 = int_to_ptr.vmem [resolvable:$true] %s902_s3 }
  0x13   :  { %993 = vmatprep.subr.bf16.mxu0 %v1096_v7  ;;  %1004 = vmatpush3.bf16.msra.mxu1 %v1097_v51  ;;  %v1101_v62 = vld [vmem:[#allocation2 + $0x28] sm:$0xff]   ;;  %v1103_v6 = vld [vmem:[#allocation2 + $0x18] sm:$0xff]   ;;  %s1157_s4 = scalar_lea.vmem %s903_s3, 128  ;;  %p1162_p6 = scmp.lt.s32.totalorder %s903_s3, %s903_s3 }
  0x14   :  { %73 = vperm.xlu1 %1083, %v1217_v3   ;;  %1085 = vset.pattern.permute.xlu0 %v1184_v0  ;;  %p1158_p5 = scmp.ne.s32.totalorder %s903_s3, %s1157_s4  ;;  %p1163_p7 = scmp.lt.s32.totalorder %s1157_s4, %s1157_s4 }
  0x15   :  { %76 = vperm.xlu0 %1085, %v1222_v4   ;;  %1005 = vmatprep.subr.bf16.mxu1 %v1098_v52 }
  0x16   :  { %994 = vmatpush3.bf16.msra.mxu0 %v1096_v7  ;;  %v1104_v7 = vld [vmem:[#allocation2 + $0x10] sm:$0xff]   ;;  %p1164_p8 = por %p1163_p7, %p1162_p6 }
  0x17   :  { %1006 = vmatpush3.bf16.msra.mxu1 %v1098_v52 }
  0x18   :  { %1084 = vset.pattern.permute.xlu1 %v1185_v1  ;;  %1007 = vmatprep.subr.bf16.mxu1 %v1099_v56  ;;  %p1165_p9 = pnand %p1164_p8, %p1158_p5 }
  0x19   :  { %47 = vperm.xlu1 %1084, %v1228_v5   ;;  %1086 = vset.pattern.permute.xlu0 %v1185_v1 }
  0x1a   :  { %41 = vperm.xlu0 %1086, %v1217_v3  }
  0x1b   :  { %1008 = vmatpush3.bf16.msra.mxu1 %v1099_v56 }
  0x1c   :  { %1009 = vmatprep.subr.bf16.mxu1 %v1100_v59 }
  0x1d   :  { %1087 = vset.pattern.permute.xlu1 %v1184_v0 }
  0x1e   :  { %79 = vperm.xlu1 %1087, %v1228_v5   ;;  %44 = vperm.xlu0 %1086, %v1222_v4  }
  0x1f   :  { %1010 = vmatpush3.bf16.msra.mxu1 %v1100_v59 }
  0x20   :  { %1011 = vmatprep.subr.bf16.mxu1 %v1101_v62 }
  0x22   :  { %1088 = vset.pattern.permute.xlu1 %v1185_v1  ;;  %53 = vperm.xlu0 %1086, %v1238_v8  }
  0x23   :  { %50 = vperm.xlu1 %1088, %v1245_v9   ;;  %1012 = vmatpush3.bf16.msra.mxu1 %v1101_v62 }
  0x26   :  { %56 = vperm.xlu0 %1086, %v1250_v10  }
  0x27   :  { %1089 = vset.pattern.permute.xlu1 %v1184_v0 }
  0x28   :  { %82 = vperm.xlu1 %1089, %v1245_v9  }
  0x2a   :  { %1091 = vset.pattern.permute.xlu0 %v1184_v0 }
  0x2b   :  { %88 = vperm.xlu0 %1091, %v1250_v10  }
  0x2c   :  { %85 = vperm.xlu1 %1089, %v1238_v8  }
  0x2f   :  { %1093 = vset.pattern.permute.xlu0 %v1185_v1 }
  0x30   :  { %1090 = vset.pattern.permute.xlu1 %v1185_v1 }
  0x31   :  { %59 = vperm.xlu1 %1090, %v1262_v11  }
  0x35   :  { %1092 = vset.pattern.permute.xlu1 %v1184_v0  ;;  %v1102_v0 = vld [vmem:[#allocation2 + $0x20] sm:$0xff]  }
  0x36   :  { %91 = vperm.xlu1 %1092, %v1262_v11   ;;  %1013 = vmatprep.subr.bf16.mxu1 %v1102_v0 }
  0x37   :  { %1014 = vmatpush3.bf16.msra.mxu1 %v1102_v0 }
  0x38   :  { %1015 = vmatprep.subr.bf16.mxu1 %v1103_v6 }
  0x3a   :  { %1094 = vset.pattern.permute.xlu1 %v1185_v1 }
  0x3b   :  { %1016 = vmatpush3.bf16.msra.mxu1 %v1103_v6 }
  0x3c   :  { %1017 = vmatprep.subr.bf16.mxu1 %v1104_v7 }
  0x3f   :  { %1018 = vmatpush3.bf16.msra.mxu1 %v1104_v7 }
  0x8b   :  { %v71_v13 = vpop.permute.xlu1 %70  ;;  %v39_v14 = vpop.permute.xlu0 %38 }
  0x8c   :  { %vm93_vm0 = vcmp.eq.s32.totalorder %v36_v15, %v71_v13  ;;  %vm61_vm1 = vcmp.eq.s32.totalorder %v36_v15, %v39_v14  ;;  %v1105_v13 = vld [vmem:[#allocation2 + $0x90] sm:$0xff]   ;;  %v1106_v14 = vld [vmem:[#allocation2 + $0x88] sm:$0xff]  }
  0x8d   :  { %vm101_vm2 = vmor %vm61_vm1, %vm93_vm0  ;;  %1027 = vmatprep.subr.bf16.mxu0 %v1105_v13 }
  0x8e   :  { %v911_v21 = vsel %vm101_vm2, 1.0, %v1186_v20 }
  0x8f   :  { %v74_v16 = vpop.permute.xlu1 %73 }
  0x90   :  { %v77_v17 = vpop.permute.xlu0 %76  ;;  %vm94_vm3 = vcmp.eq.s32.totalorder %v36_v15, %v74_v16  ;;  %v1108_v16 = vld [vmem:[#allocation2 + $0x78] sm:$0xff]  }
  0x91   :  { %vm95_vm7 = vcmp.eq.s32.totalorder %v36_v15, %v77_v17  ;;  %v1109_v17 = vld [vmem:[#allocation2 + $0x70] sm:$0xff]  }
  0x94   :  { %v48_v18 = vpop.permute.xlu1 %47 }
  0x95   :  { %v42_v19 = vpop.permute.xlu0 %41  ;;  %vm64_vm8 = vcmp.eq.s32.totalorder %v36_v15, %v48_v18 }
  0x96   :  { %vm62_vm4 = vcmp.eq.s32.totalorder %v36_v15, %v42_v19 }
  0x97   :  { %vm102_vm5 = vmor %vm62_vm4, %vm94_vm3 }
  0x98   :  { %v912_v22 = vsel %vm102_vm5, 1.0, %v1186_v20 }
  0x99   :  { %v80_v23 = vpop.permute.xlu1 %79  ;;  %v45_v24 = vpop.permute.xlu0 %44  ;;  %v125_v25 = vpack.c.bf16 %v912_v22, %v911_v21 }
  0x9a   :  { %vm96_vm9 = vcmp.eq.s32.totalorder %v36_v15, %v80_v23  ;;  %vm63_vm10 = vcmp.eq.s32.totalorder %v36_v15, %v45_v24 }
  0x9b   :  { %vm104_vm11 = vmor %vm64_vm8, %vm96_vm9  ;;  %995 = vmatprep.mubr.msk.bf16.mxu0 %vm145_vm6, %v125_v25 }
  0x9c   :  { %v914_v26 = vsel %vm104_vm11, 1.0, %v1186_v20  ;;  %vm103_vm12 = vmor %vm63_vm10, %vm95_vm7  ;;  %vm770_vm10 = vcmp.eq.s32.totalorder %v1222_v4, 0  ;;  %vm768_vm11 = vcmp.eq.s32.totalorder %v1210_v2, 0 }
  0x9d   :  { %v913_v27 = vsel %vm103_vm12, 1.0, %v1186_v20  ;;  %v54_v30 = vpop.permute.xlu0 %53  ;;  %vm771_vm12 = vcmp.eq.s32.totalorder %v1228_v5, 0 }
  0x9e   :  { %v126_v28 = vpack.c.bf16 %v914_v26, %v913_v27  ;;  %v51_v29 = vpop.permute.xlu1 %50  ;;  %vm66_vm0 = vcmp.eq.s32.totalorder %v36_v15, %v54_v30 }
  0x9f   :  { %vm65_vm14 = vcmp.eq.s32.totalorder %v36_v15, %v51_v29 }
  0xa0   :  { %996 = vmatmul.mubr.msk.bf16.vlgmr.msra.gmra.mxu0 %vm145_vm6, %v126_v28 }
  0xa1   :  { %v57_v32 = vpop.permute.xlu0 %56  ;;  %1028 = vmatpush3.bf16.msra.mxu0 %v1105_v13 }
  0xa2   :  { %vm67_vm4 = vcmp.eq.s32.totalorder %v36_v15, %v57_v32  ;;  %1029 = vmatprep.subr.bf16.mxu0 %v1106_v14 }
  0xa3   :  { %v83_v31 = vpop.permute.xlu1 %82 }
  0xa4   :  { %vm97_vm13 = vcmp.eq.s32.totalorder %v36_v15, %v83_v31 }
  0xa5   :  { %vm105_vm15 = vmor %vm65_vm14, %vm97_vm13  ;;  %1030 = vmatpush3.bf16.msra.mxu0 %v1106_v14  ;;  %vm772_vm13 = vcmp.eq.s32.totalorder %v1245_v9, 0  ;;  %vm773_vm14 = vcmp.eq.s32.totalorder %v1238_v8, 0  ;;  %v498_v9 = vld [vmem:[#allocation2 + $0x98] sm:$0x1] }
  0xa6   :  { %v915_v34 = vsel %vm105_vm15, 1.0, %v1186_v20  ;;  %v89_v36 = vpop.permute.xlu0 %88  ;;  %v781_v2 = vsel %vm773_vm14, 1, %v1185_v1  ;;  %vm774_vm15 = vcmp.eq.s32.totalorder %v1250_v10, 0  ;;  %vm890_vm14 = vcmask 1046534  }
  0xa7   :  { %v86_v33 = vpop.permute.xlu1 %85  ;;  %vm99_vm3 = vcmp.eq.s32.totalorder %v36_v15, %v89_v36  ;;  %v782_v4 = vsel %vm774_vm15, 1, %v1185_v1  ;;  %vm892_vm15 = vcmask 1047559  }
  0xa8   :  { %vm98_vm1 = vcmp.eq.s32.totalorder %v36_v15, %v86_v33  ;;  %vm107_vm5 = vmor %vm67_vm4, %vm99_vm3 }
  0xa9   :  { %vm106_vm2 = vmor %vm66_vm0, %vm98_vm1  ;;  %v917_v40 = vsel %vm107_vm5, 1.0, %v1186_v20  ;;  %vm775_vm0 = vcmp.eq.s32.totalorder %v1262_v11, 0 }
  0xaa   :  { %v916_v35 = vsel %vm106_vm2, 1.0, %v1186_v20  ;;  %v783_v5 = vsel %vm775_vm0, 1, %v1185_v1 }
  0xab   :  { %v127_v37 = vpack.c.bf16 %v916_v35, %v915_v34 }
  0xac   :  { %v60_v38 = vpop.permute.xlu1 %59 }
  0xad   :  { %999 = vmatprep.mubr.msk.bf16.mxu0 %vm145_vm6, %v127_v37  ;;  %vm68_vm7 = vcmp.eq.s32.totalorder %v36_v15, %v60_v38 }
  0xb1   :  { %v92_v39 = vpop.permute.xlu1 %91 }
  0xb2   :  { %vm100_vm8 = vcmp.eq.s32.totalorder %v36_v15, %v92_v39  ;;  %v1107_v15 = vld [vmem:[#allocation2 + $0x80] sm:$0xff]  }
  0xb3   :  { %vm108_vm9 = vmor %vm68_vm7, %vm100_vm8  ;;  %1031 = vmatprep.subr.bf16.mxu0 %v1107_v15 }
  0xb4   :  { %v918_v41 = vsel %vm108_vm9, 1.0, %v1186_v20  ;;  %1032 = vmatpush3.bf16.msra.mxu0 %v1107_v15 }
  0xb5   :  { %v128_v42 = vpack.c.bf16 %v918_v41, %v917_v40  ;;  %1033 = vmatprep.subr.bf16.mxu0 %v1108_v16 }
  0xb7   :  { %1000 = vmatmul.mubr.msk.bf16.gmra.mxu0 %vm145_vm6, %v128_v42  ;;  %vm769_vm6 = vcmp.eq.s32.totalorder %v1217_v3, 0  ;;  %v780_v3 = vsel %vm772_vm13, 1, %v1185_v1  ;;  %vm888_vm13 = vcmask 1045509  }
  0xb8   :  { %1034 = vmatpush3.bf16.msra.mxu0 %v1108_v16 }
  0xb9   :  { %1035 = vmatprep.subr.bf16.mxu0 %v1109_v17 }
  0xbc   :  { %1036 = vmatpush3.bf16.msra.mxu0 %v1109_v17 }
 0x160   :  { %v1274_v43 = vpop.f32.mrf.mxu0 }
 0x161   :  { %227 = vadd.xlane.f32.xlu0 %v1274_v43  ;;  %v249_v45 = vmul.f32 %v1274_v43, %v1274_v43 }
 0x162   :  { %v1277_v44 = vpop.f32.mrf.mxu0 }
 0x163   :  { %223 = vadd.xlane.f32.xlu1 %v1277_v44  ;;  %v247_v47 = vmul.f32 %v1277_v44, %v1277_v44 }
 0x164   :  { %v1282_v46 = vpop.f32.mrf.mxu0 }
 0x165   :  { %259 = vadd.xlane.f32.xlu0 %v249_v45  ;;  %v250_v48 = vmul.f32 %v1282_v46, %v1282_v46 }
 0x166   :  { %v1289_v49 = vpop.f32.mrf.mxu0 }
 0x167   :  { %229 = vadd.xlane.f32.xlu1 %v1282_v46  ;;  %v248_v50 = vmul.f32 %v1289_v49, %v1289_v49 }
 0x169   :  { %255 = vadd.xlane.f32.xlu0 %v247_v47 }
 0x16b   :  { %261 = vadd.xlane.f32.xlu1 %v250_v48 }
 0x16d   :  { %225 = vadd.xlane.f32.xlu0 %v1289_v49 }
 0x16f   :  { %257 = vadd.xlane.f32.xlu1 %v248_v50 }
 0x177   :  { %v1294_v53 = vpop.f32.mrf.mxu0 }
 0x178   :  { %235 = vadd.xlane.f32.xlu0 %v1294_v53  ;;  %v253_v60 = vmul.f32 %v1294_v53, %v1294_v53 }
 0x179   :  { %v1297_v54 = vpop.f32.mrf.mxu0 }
 0x17a   :  { %v251_v57 = vmul.f32 %v1297_v54, %v1297_v54 }
 0x17b   :  { %v1299_v55 = vpop.f32.mrf.mxu0 }
 0x17c   :  { %231 = vadd.xlane.f32.xlu0 %v1297_v54  ;;  %237 = vadd.xlane.f32.xlu1 %v1299_v55  ;;  %v254_v63 = vmul.f32 %v1299_v55, %v1299_v55 }
 0x17d   :  { %v1305_v58 = vpop.f32.mrf.mxu0 }
 0x17e   :  { %v252_v61 = vmul.f32 %v1305_v58, %v1305_v58 }
 0x180   :  { %263 = vadd.xlane.f32.xlu0 %v251_v57  ;;  %233 = vadd.xlane.f32.xlu1 %v1305_v58 }
 0x184   :  { %267 = vadd.xlane.f32.xlu0 %v253_v60  ;;  %265 = vadd.xlane.f32.xlu1 %v252_v61 }
 0x188   :  { %269 = vadd.xlane.f32.xlu1 %v254_v63 }
 0x1ea   :  { %v228_v18 = vpop.xlane.xlu0 %227 }
 0x1eb   :  { %v1314_v20 = vmul.f32 0.03125, %v228_v18 }
 0x1ec   :  { %v224_v19 = vpop.xlane.xlu1 %223 }
 0x1ed   :  { %v1316_v22 = vmul.f32 0.03125, %v224_v19  ;;  %v281_v26 = vmul.f32 %v1314_v20, %v1314_v20 }
 0x1ee   :  { %v260_v21 = vpop.xlane.xlu0 %259 }
 0x1ef   :  { %v273_v23 = vmul.f32 0.03125, %v260_v21  ;;  %v279_v28 = vmul.f32 %v1316_v22, %v1316_v22 }
 0x1f0   :  { %v230_v24 = vpop.xlane.xlu1 %229 }
 0x1f1   :  { %v242_v25 = vmul.f32 0.03125, %v230_v24  ;;  %v289_v30 = vsub.f32 %v273_v23, %v281_v26 }
 0x1f2   :  { %v256_v27 = vpop.xlane.xlu0 %255 }
 0x1f3   :  { %v271_v29 = vmul.f32 0.03125, %v256_v27  ;;  %v282_v32 = vmul.f32 %v242_v25, %v242_v25  ;;  %v297_v38 = vmax.f32 %v289_v30, 0.0  ;;  %v306_v17 = vsub.f32 %v1282_v46, %v242_v25 }
 0x1f4   :  { %v262_v31 = vpop.xlane.xlu1 %261 }
 0x1f5   :  { %v287_v33 = vsub.f32 %v271_v29, %v279_v28  ;;  %v274_v34 = vmul.f32 0.03125, %v262_v31  ;;  %v313_v48 = vadd.f32 1e-05, %v297_v38 }
 0x1f6   :  { %v226_v35 = vpop.xlane.xlu0 %225 }
 0x1f7   :  { %v290_v36 = vsub.f32 %v274_v34, %v282_v32  ;;  %v240_v37 = vmul.f32 0.03125, %v226_v35  ;;  %v295_v40 = vmax.f32 %v287_v33, 0.0  ;;  %v305_v32 = vsub.f32 %v1274_v43, %v1314_v20 }
 0x1f8   :  { %v258_v39 = vpop.xlane.xlu1 %257  ;;  %v303_v33 = vsub.f32 %v1277_v44, %v1316_v22 }
 0x1f9   :  { %v298_v41 = vmax.f32 %v290_v36, 0.0  ;;  %v280_v42 = vmul.f32 %v240_v37, %v240_v37  ;;  %v272_v45 = vmul.f32 0.03125, %v258_v39  ;;  %v311_v51 = vadd.f32 1e-05, %v295_v40 }
 0x1fa   :  { %v304_v18 = vsub.f32 %v1289_v49, %v240_v37 }
 0x1fb   :  { %v314_v47 = vadd.f32 1e-05, %v298_v41  ;;  %v288_v50 = vsub.f32 %v272_v45, %v280_v42 }
 0x1fd   :  { %v296_v52 = vmax.f32 %v288_v50, 0.0  ;;  %1121 = vrsqrt.f32 %v314_v47 }
 0x1fe   :  { %1123 = vrsqrt.f32 %v313_v48 }
 0x1ff   :  { %v312_v56 = vadd.f32 1e-05, %v296_v52  ;;  %1125 = vrsqrt.f32 %v311_v51 }
 0x201   :  { %v236_v57 = vpop.xlane.xlu0 %235  ;;  %1127 = vrsqrt.f32 %v312_v56 }
 0x202   :  { %v245_v62 = vmul.f32 0.03125, %v236_v57 }
 0x204   :  { %v285_v19 = vmul.f32 %v245_v62, %v245_v62 }
 0x205   :  { %v238_v59 = vpop.xlane.xlu1 %237  ;;  %v232_v60 = vpop.xlane.xlu0 %231 }
 0x206   :  { %v243_v61 = vmul.f32 0.03125, %v232_v60  ;;  %v246_v21 = vmul.f32 0.03125, %v238_v59 }
 0x208   :  { %v283_v6 = vmul.f32 %v243_v61, %v243_v61  ;;  %v286_v39 = vmul.f32 %v246_v21, %v246_v21  ;;  %v307_v51 = vsub.f32 %v1297_v54, %v243_v61  ;;  %v1111_v54 = vld [vmem:[#allocation2 + $0x60] sm:$0xff]   ;;  %v1113_v61 = vld [vmem:[#allocation2 + $0xd8] sm:$0xff]  }
 0x209   :  { %v234_v63 = vpop.xlane.xlu1 %233  ;;  %v264_v0 = vpop.xlane.xlu0 %263  ;;  %1051 = vmatprep.subr.bf16.mxu1 %v1113_v61 }
 0x20a   :  { %v244_v7 = vmul.f32 0.03125, %v234_v63  ;;  %v275_v13 = vmul.f32 0.03125, %v264_v0  ;;  %v1122_v14 = vpop.eup %1121  ;;  %v309_v63 = vsub.f32 %v1294_v53, %v245_v62  ;;  %v310_v0 = vsub.f32 %v1299_v55, %v246_v21  ;;  %v1114_v53 = vld [vmem:[#allocation2 + $0xd0] sm:$0xff]   ;;  %v1115_v55 = vld [vmem:[#allocation2 + $0xc8] sm:$0xff]   ;;  %v1116_v62 = vld [vmem:[#allocation2 + $0xc0] sm:$0xff]  }
 0x20b   :  { %v1124_v16 = vpop.eup %1123  ;;  %v330_v34 = vmul.f32 %v1122_v14, %v306_v17  ;;  %v1110_v17 = vld [vmem:[#allocation2 + $0x68] sm:$0xff]  }
 0x20c   :  { %v291_v15 = vsub.f32 %v275_v13, %v283_v6  ;;  %v1126_v26 = vpop.eup %1125  ;;  %v284_v27 = vmul.f32 %v244_v7, %v244_v7  ;;  %v329_v38 = vmul.f32 %v1124_v16, %v305_v32  ;;  %v308_v52 = vsub.f32 %v1305_v58, %v244_v7  ;;  %1037 = vmatprep.subr.bf16.mxu0 %v1110_v17  ;;  %v1112_v58 = vld [vmem:[#allocation2 + $0x58] sm:$0xff]  }
 0x20d   :  { %v266_v23 = vpop.xlane.xlu1 %265  ;;  %v268_v24 = vpop.xlane.xlu0 %267  ;;  %v327_v37 = vmul.f32 %v1126_v26, %v303_v33  ;;  %1038 = vmatpush3.bf16.msra.mxu0 %v1110_v17  ;;  %v1117_v7 = vld [vmem:[#allocation2 + $0xb8] sm:$0xff]  }
 0x20e   :  { %v299_v28 = vmax.f32 %v291_v15, 0.0  ;;  %v276_v29 = vmul.f32 0.03125, %v266_v23  ;;  %v277_v30 = vmul.f32 0.03125, %v268_v24  ;;  %v1128_v31 = vpop.eup %1127  ;;  %v354_v47 = vpack.c.bf16 %v330_v34, %v329_v38  ;;  %1039 = vmatprep.subr.bf16.mxu0 %v1111_v54 }
 0x20f   :  { %v328_v35 = vmul.f32 %v1128_v31, %v304_v18  ;;  %v358_v18 = vshrl.u32 %v35_v12, 7 }
 0x210   :  { %v315_v46 = vadd.f32 1e-05, %v299_v28  ;;  %v292_v25 = vsub.f32 %v276_v29, %v284_v27  ;;  %v293_v49 = vsub.f32 %v277_v30, %v285_v19  ;;  %v351_v19 = vld [vmem:[#allocation2 + $0x50] sm:$0x1] }
 0x211   :  { %v270_v36 = vpop.xlane.xlu1 %269  ;;  %v353_v45 = vpack.c.bf16 %v328_v35, %v327_v37  ;;  %1040 = vmatpush3.bf16.msra.mxu0 %v1111_v54  ;;  %v352_v21 = vunpack.c.l.bf16 %v351_v19  ;;  %v1333_v23 = vsub.s32 0, %v358_v18 }
 0x212   :  { %v300_v40 = vmax.f32 %v292_v25, 0.0  ;;  %v301_v41 = vmax.f32 %v293_v49, 0.0  ;;  %v278_v42 = vmul.f32 0.03125, %v270_v36  ;;  %1129 = vrsqrt.f32 %v315_v46  ;;  %1041 = vmatprep.subr.bf16.mxu0 %v1112_v58 }
 0x213   :  { %1019 = vmatprep.mubr.bf16.mxu1 %v353_v45  ;;  %v360_v26 = vrot.slane %v352_v21, %v1333_v23 }
 0x214   :  { %v316_v48 = vadd.f32 1e-05, %v300_v40  ;;  %v317_v43 = vadd.f32 1e-05, %v301_v41  ;;  %v294_v20 = vsub.f32 %v278_v42, %v286_v39  ;;  %1020 = vmatmul.mubr.bf16.vlgmr.msra.gmra.mxu1 %v354_v47 }
 0x215   :  { %1042 = vmatpush3.bf16.msra.mxu0 %v1112_v58  ;;  %1052 = vmatpush3.bf16.msra.mxu1 %v1113_v61 }
 0x216   :  { %1131 = vrsqrt.f32 %v316_v48  ;;  %v302_v44 = vmax.f32 %v294_v20, 0.0  ;;  %1053 = vmatprep.subr.bf16.mxu1 %v1114_v53 }
 0x217   :  { %1133 = vrsqrt.f32 %v317_v43 }
 0x218   :  { %v318_v22 = vadd.f32 1e-05, %v302_v44 }
 0x219   :  { %1054 = vmatpush3.bf16.msra.mxu1 %v1114_v53 }
 0x21a   :  { %1135 = vrsqrt.f32 %v318_v22  ;;  %1055 = vmatprep.subr.bf16.mxu1 %v1115_v55 }
 0x21d   :  { %1056 = vmatpush3.bf16.msra.mxu1 %v1115_v55 }
 0x21e   :  { %1057 = vmatprep.subr.bf16.mxu1 %v1116_v62 }
 0x21f   :  { %v1130_v50 = vpop.eup %1129 }
 0x220   :  { %v331_v57 = vmul.f32 %v1130_v50, %v307_v51  ;;  %v1118_v50 = vld [vmem:[#allocation2 + $0xb0] sm:$0xff]   ;;  %v1119_v51 = vld [vmem:[#allocation2 + $0xa8] sm:$0xff]  }
 0x221   :  { %1058 = vmatpush3.bf16.msra.mxu1 %v1116_v62 }
 0x222   :  { %1059 = vmatprep.subr.bf16.mxu1 %v1117_v7 }
 0x223   :  { %v1132_v56 = vpop.eup %1131 }
 0x224   :  { %v332_v59 = vmul.f32 %v1132_v56, %v308_v52  ;;  %v1134_v60 = vpop.eup %1133  ;;  %v1120_v52 = vld [vmem:[#allocation2 + $0xa0] sm:$0xff]   ;;  %v777_v56 = vsel %vm769_vm6, 1, %v1185_v1  ;;  %vm880_vm6 = vcmask 1041409  }
 0x225   :  { %v333_v14 = vmul.f32 %v1134_v60, %v309_v63  ;;  %1060 = vmatpush3.bf16.msra.mxu1 %v1117_v7  ;;  %788 = vperm.xlu1 %1094, %v777_v56   ;;  %v779_v60 = vsel %vm771_vm12, 1, %v1185_v1  ;;  %v499_v63 = vunpack.c.l.bf16 %v498_v9  ;;  %vm886_vm12 = vcmask 1044484  }
 0x226   :  { %v355_v6 = vpack.c.bf16 %v332_v59, %v331_v57  ;;  %1061 = vmatprep.subr.bf16.mxu1 %v1118_v50  ;;  %v778_v57 = vsel %vm770_vm10, 1, %v1185_v1  ;;  %v776_v59 = vsel %vm768_vm11, 1, %v1185_v1  ;;  %vm882_vm10 = vcmask 1042434  }
 0x227   :  { %v1136_v13 = vpop.eup %1135  ;;  %785 = vperm.xlu0 %1093, %v776_v59   ;;  %vm884_vm11 = vcmask 1043459  }
 0x228   :  { %1023 = vmatprep.mubr.bf16.mxu1 %v355_v6  ;;  %v334_v15 = vmul.f32 %v1136_v13, %v310_v0  ;;  %v507_v6 = vrot.slane %v499_v63, %v1333_v23 }
 0x229   :  { %1062 = vmatpush3.bf16.msra.mxu1 %v1118_v50  ;;  %791 = vperm.xlu1 %1094, %v778_v57  }
 0x22a   :  { %v356_v16 = vpack.c.bf16 %v334_v15, %v333_v14  ;;  %1063 = vmatprep.subr.bf16.mxu1 %v1119_v51 }
 0x22c   :  { %1024 = vmatmul.mubr.bf16.gmra.mxu1 %v356_v16 }
 0x22d   :  { %1064 = vmatpush3.bf16.msra.mxu1 %v1119_v51  ;;  %794 = vperm.xlu1 %1094, %v779_v60  }
 0x22e   :  { %1065 = vmatprep.subr.bf16.mxu1 %v1120_v52 }
 0x231   :  { %1066 = vmatpush3.bf16.msra.mxu1 %v1120_v52  ;;  %797 = vperm.xlu1 %1094, %v780_v3  }
 0x235   :  { %800 = vperm.xlu1 %1094, %v781_v2  }
 0x239   :  { %803 = vperm.xlu1 %1094, %v782_v4  }
 0x23d   :  { %806 = vperm.xlu1 %1094, %v783_v5  }
 0x2d4   :  { %v1021_v24 = vpop.f32.mrf.mxu1 }
 0x2d5   :  { %v452_v31 = vadd.f32 %v1021_v24, %v360_v26 }
 0x2d6   :  { %v443_v27 = vpop.f32.mrf.mxu1 }
 0x2d7   :  { %v444_v29 = vadd.f32 %v443_v27, %v360_v26  ;;  %v476_v49 = vmax.f32 %v452_v31, 0.0 }
 0x2d8   :  { %v1022_v28 = vpop.f32.mrf.mxu1 }
 0x2d9   :  { %v455_v30 = vadd.f32 %v1022_v28, %v360_v26  ;;  %v474_v46 = vmax.f32 %v444_v29, 0.0 }
 0x2da   :  { %v446_v32 = vpop.f32.mrf.mxu1 }
 0x2db   :  { %v447_v33 = vadd.f32 %v446_v32, %v360_v26  ;;  %v477_v34 = vmax.f32 %v455_v30, 0.0 }
 0x2dd   :  { %v475_v25 = vmax.f32 %v447_v33, 0.0  ;;  %v501_v12 = vpack.c.bf16 %v477_v34, %v476_v49  ;;  %v789_v33 = vpop.permute.xlu1 %788 }
 0x2de   :  { %vm809_vm1 = vcmp.eq.s32.totalorder %v789_v33, 1 }
 0x2df   :  { %v500_v35 = vpack.c.bf16 %v475_v25, %v474_v46  ;;  %v645_v46 = vld [vmem:[#allocation2 + $0xe0] sm:$0x1] }
 0x2e1   :  { %1043 = vmatprep.mubr.bf16.mxu0 %v500_v35  ;;  %v792_v34 = vpop.permute.xlu1 %791  ;;  %v646_v35 = vunpack.c.l.bf16 %v645_v46 }
 0x2e2   :  { %1044 = vmatmul.mubr.bf16.vlgmr.msra.gmra.mxu0 %v501_v12  ;;  %vm810_vm3 = vcmp.eq.s32.totalorder %v792_v34, 1 }
 0x2e5   :  { %v795_v49 = vpop.permute.xlu1 %794 }
 0x2e6   :  { %vm811_vm4 = vcmp.eq.s32.totalorder %v795_v49, 1 }
 0x2ec   :  { %v1025_v36 = vpop.f32.mrf.mxu1 }
 0x2ed   :  { %v468_v41 = vadd.f32 %v1025_v36, %v360_v26 }
 0x2ee   :  { %v459_v37 = vpop.f32.mrf.mxu1 }
 0x2ef   :  { %v460_v39 = vadd.f32 %v459_v37, %v360_v26  ;;  %v480_v20 = vmax.f32 %v468_v41, 0.0  ;;  %v654_v37 = vrot.slane %v646_v35, %v1333_v23 }
 0x2f0   :  { %v1026_v38 = vpop.f32.mrf.mxu1 }
 0x2f1   :  { %v471_v40 = vadd.f32 %v1026_v38, %v360_v26  ;;  %v478_v48 = vmax.f32 %v460_v39, 0.0  ;;  %v786_v38 = vpop.permute.xlu0 %785 }
 0x2f2   :  { %v462_v42 = vpop.f32.mrf.mxu1  ;;  %vm808_vm2 = vcmp.eq.s32.totalorder %v786_v38, 1 }
 0x2f3   :  { %v463_v45 = vadd.f32 %v462_v42, %v360_v26  ;;  %v481_v47 = vmax.f32 %v471_v40, 0.0  ;;  %v798_v40 = vpop.permute.xlu1 %797 }
 0x2f4   :  { %vm812_vm7 = vcmp.eq.s32.totalorder %v798_v40, 1 }
 0x2f5   :  { %v479_v43 = vmax.f32 %v463_v45, 0.0  ;;  %v503_v22 = vpack.c.bf16 %v481_v47, %v480_v20 }
 0x2f7   :  { %v502_v44 = vpack.c.bf16 %v479_v43, %v478_v48 }
 0x2f9   :  { %1047 = vmatprep.mubr.bf16.mxu0 %v502_v44  ;;  %v801_v44 = vpop.permute.xlu1 %800 }
 0x2fa   :  { %1048 = vmatmul.mubr.bf16.gmra.mxu0 %v503_v22  ;;  %vm813_vm9 = vcmp.eq.s32.totalorder %v801_v44, 1 }
 0x2fd   :  { %v804_v59 = vpop.permute.xlu1 %803 }
 0x2fe   :  { %vm814_vm5 = vcmp.eq.s32.totalorder %v804_v59, 1 }
 0x3a2   :  { %v1045_v0 = vpop.f32.mrf.mxu0 }
 0x3a3   :  { %v599_v16 = vadd.f32 %v1045_v0, %v507_v6 }
 0x3a4   :  { %v590_v8 = vpop.f32.mrf.mxu0 }
 0x3a5   :  { %v591_v14 = vadd.f32 %v590_v8, %v507_v6  ;;  %v623_v11 = vmax.f32 %v599_v16, 0.0  ;;  %v807_v8 = vpop.permute.xlu1 %806 }
 0x3a6   :  { %v1046_v13 = vpop.f32.mrf.mxu0  ;;  %vm815_vm8 = vcmp.eq.s32.totalorder %v807_v8, 1 }
 0x3a7   :  { %v602_v15 = vadd.f32 %v1046_v13, %v507_v6  ;;  %v621_v58 = vmax.f32 %v591_v14, 0.0 }
 0x3a8   :  { %v593_v10 = vpop.f32.mrf.mxu0 }
 0x3a9   :  { %v594_v17 = vadd.f32 %v593_v10, %v507_v6  ;;  %v624_v54 = vmax.f32 %v602_v15, 0.0 }
 0x3ab   :  { %v622_v61 = vmax.f32 %v594_v17, 0.0  ;;  %v648_v55 = vpack.c.bf16 %v624_v54, %v623_v11 }
 0x3ad   :  { %v647_v53 = vpack.c.bf16 %v622_v61, %v621_v58 }
 0x3af   :  { %1067 = vmatprep.mubr.bf16.mxu1 %v647_v53 }
 0x3b0   :  { %1068 = vmatmul.mubr.bf16.vlgmr.msra.gmra.mxu1 %v648_v55 }
 0x3ba   :  { %v1049_v1 = vpop.f32.mrf.mxu0 }
 0x3bb   :  { %v615_v21 = vadd.f32 %v1049_v1, %v507_v6 }
 0x3bc   :  { %v606_v62 = vpop.f32.mrf.mxu0 }
 0x3bd   :  { %v607_v18 = vadd.f32 %v606_v62, %v507_v6  ;;  %v627_v30 = vmax.f32 %v615_v21, 0.0 }
 0x3be   :  { %v1050_v7 = vpop.f32.mrf.mxu0 }
 0x3bf   :  { %v618_v19 = vadd.f32 %v1050_v7, %v507_v6  ;;  %v625_v28 = vmax.f32 %v607_v18, 0.0 }
 0x3c0   :  { %v609_v24 = vpop.f32.mrf.mxu0 }
 0x3c1   :  { %v610_v26 = vadd.f32 %v609_v24, %v507_v6  ;;  %v628_v27 = vmax.f32 %v618_v19, 0.0 }
 0x3c3   :  { %v626_v29 = vmax.f32 %v610_v26, 0.0  ;;  %v650_v32 = vpack.c.bf16 %v628_v27, %v627_v30 }
 0x3c5   :  { %v649_v31 = vpack.c.bf16 %v626_v29, %v625_v28 }
 0x3c7   :  { %1071 = vmatprep.mubr.bf16.mxu1 %v649_v31 }
 0x3c8   :  { %1072 = vmatmul.mubr.bf16.gmra.mxu1 %v650_v32 }
 0x470   :  { %v1069_v25 = vpop.f32.mrf.mxu1 }
 0x471   :  { %v746_v47 = vadd.f32 %v1069_v25, %v654_v37 }
 0x472   :  { %v737_v12 = vpop.f32.mrf.mxu1 }
 0x473   :  { %v738_v41 = vadd.f32 %v737_v12, %v654_v37  ;;  %v818_v22 = vsel %vm810_vm3, -inf, %v746_v47 }
 0x474   :  { %v1070_v36 = vpop.f32.mrf.mxu1  ;;  %v836_v23 = vrot.slane %v818_v22, 4 }
 0x475   :  { %v816_v48 = vsel %vm808_vm2, -inf, %v738_v41  ;;  %v749_v43 = vadd.f32 %v1070_v36, %v654_v37 }
 0x476   :  { %v740_v39 = vpop.f32.mrf.mxu1  ;;  %v824_v50 = vrot.slane %v816_v48, 4  ;;  %v837_v3 = vmax.f32 %v818_v22, %v836_v23 }
 0x477   :  { %v741_v42 = vadd.f32 %v740_v39, %v654_v37  ;;  %v819_v51 = vsel %vm811_vm4, -inf, %v749_v43 }
 0x478   :  { %v825_v56 = vmax.f32 %v816_v48, %v824_v50  ;;  %v842_v57 = vrot.slane %v819_v51, 4  ;;  %v838_v6 = vrot.slane %v837_v3, 2 }
 0x479   :  { %v817_v45 = vsel %vm809_vm1, -inf, %v741_v42 }
 0x47a   :  { %v830_v20 = vrot.slane %v817_v45, 4  ;;  %v826_v2 = vrot.slane %v825_v56, 2  ;;  %v843_v5 = vmax.f32 %v819_v51, %v842_v57  ;;  %v839_v1 = vmax.f32 %v837_v3, %v838_v6 }
 0x47c   :  { %v831_v52 = vmax.f32 %v817_v45, %v830_v20  ;;  %v827_v15 = vmax.f32 %v825_v56, %v826_v2  ;;  %v844_v17 = vrot.slane %v843_v5, 2  ;;  %v840_v32 = vrot.slane %v839_v1, 1 }
 0x47e   :  { %v832_v60 = vrot.slane %v831_v52, 2  ;;  %v828_v18 = vrot.slane %v827_v15, 1  ;;  %v845_v24 = vmax.f32 %v843_v5, %v844_v17  ;;  %v841_v39 = vmax.f32 %v839_v1, %v840_v32 }
 0x480   :  { %v833_v63 = vmax.f32 %v831_v52, %v832_v60  ;;  %v829_v33 = vmax.f32 %v827_v15, %v828_v18  ;;  %v846_v49 = vrot.slane %v845_v24, 1 }
 0x482   :  { %v834_v61 = vrot.slane %v833_v63, 1  ;;  %v847_v47 = vmax.f32 %v845_v24, %v846_v49 }
 0x484   :  { %v835_v28 = vmax.f32 %v833_v63, %v834_v61 }
 0x486   :  { %v881_v12 = vsel %vm880_vm6, %v835_v28, %v829_v33 }
 0x487   :  { %v883_v45 = vsel %vm882_vm10, %v841_v39, %v881_v12 }
 0x488   :  { %v1073_v4 = vpop.f32.mrf.mxu1  ;;  %v885_v44 = vsel %vm884_vm11, %v847_v47, %v883_v45 }
 0x489   :  { %v762_v9 = vadd.f32 %v1073_v4, %v654_v37 }
 0x48a   :  { %v753_v0 = vpop.f32.mrf.mxu1 }
 0x48b   :  { %v822_v13 = vsel %vm814_vm5, -inf, %v762_v9  ;;  %v754_v14 = vadd.f32 %v753_v0, %v654_v37 }
 0x48c   :  { %v860_v16 = vrot.slane %v822_v13, 4  ;;  %v1074_v10 = vpop.f32.mrf.mxu1 }
 0x48d   :  { %v820_v54 = vsel %vm812_vm7, -inf, %v754_v14  ;;  %v765_v58 = vadd.f32 %v1074_v10, %v654_v37 }
 0x48e   :  { %v861_v11 = vmax.f32 %v822_v13, %v860_v16  ;;  %v848_v53 = vrot.slane %v820_v54, 4  ;;  %v756_v55 = vpop.f32.mrf.mxu1 }
 0x48f   :  { %v823_v62 = vsel %vm815_vm8, -inf, %v765_v58  ;;  %v757_v7 = vadd.f32 %v756_v55, %v654_v37 }
 0x490   :  { %v849_v19 = vmax.f32 %v820_v54, %v848_v53  ;;  %v866_v21 = vrot.slane %v823_v62, 4  ;;  %v862_v26 = vrot.slane %v861_v11, 2 }
 0x491   :  { %v821_v27 = vsel %vm813_vm9, -inf, %v757_v7 }
 0x492   :  { %v850_v29 = vrot.slane %v849_v19, 2  ;;  %v867_v30 = vmax.f32 %v823_v62, %v866_v21  ;;  %v854_v31 = vrot.slane %v821_v27, 4  ;;  %v863_v35 = vmax.f32 %v861_v11, %v862_v26 }
 0x494   :  { %v851_v34 = vmax.f32 %v849_v19, %v850_v29  ;;  %v868_v46 = vrot.slane %v867_v30, 2  ;;  %v855_v25 = vmax.f32 %v821_v27, %v854_v31  ;;  %v864_v41 = vrot.slane %v863_v35, 1 }
 0x496   :  { %v852_v36 = vrot.slane %v851_v34, 1  ;;  %v869_v37 = vmax.f32 %v867_v30, %v868_v46  ;;  %v856_v38 = vrot.slane %v855_v25, 2  ;;  %v865_v22 = vmax.f32 %v863_v35, %v864_v41 }
 0x498   :  { %v857_v40 = vmax.f32 %v855_v25, %v856_v38  ;;  %v853_v42 = vmax.f32 %v851_v34, %v852_v36  ;;  %v870_v48 = vrot.slane %v869_v37, 1 }
 0x49a   :  { %v858_v43 = vrot.slane %v857_v40, 1  ;;  %v887_v50 = vsel %vm886_vm12, %v853_v42, %v885_v44  ;;  %v871_v51 = vmax.f32 %v869_v37, %v870_v48 }
 0x49c   :  { %v859_v20 = vmax.f32 %v857_v40, %v858_v43 }
 0x49e   :  { %v889_v52 = vsel %vm888_vm13, %v859_v20, %v887_v50 }
 0x49f   :  { %v891_v23 = vsel %vm890_vm14, %v865_v22, %v889_v52 }
 0x4a0   :  { %v893_v56 = vsel %vm892_vm15, %v871_v51, %v891_v23 }
 0x4a1   :  { %895 = vst [vmem:[#allocation5] sm:$0xff] %v893_v56 }
 0x4a2   :  { %1168 = shalt.err (!%p1165_p9)
}
 0x4a3   :  { %905 = dma.vmem_to_hbm [thread:$0]  %s903_s3, 128, %s1359_s2, [#allocation4]  }
 0x4a4   :  { %1179 = dma.done.wait [#allocation4], 128  }
 0x4a5   :  { %1180 = vsyncadd [#allocation4], 4294967168 }
 0x4a6   :  { %909 = vsyncpa [#allocation3], 1 }
 0x4a7   :  { %910 = vsyncpa [#allocation4], 1 }

</bundles_post_ra>
